<compile_context>
chip_gen: v5e
topology: v5e:2x2
jax: 0.10.0
libtpu: 0.0.40
codegen_flags: <defaults>
</compile_context>

<pallas_src>
import jax
import jax.numpy as jnp
from jax.experimental import pallas as pl
from jax.experimental.pallas import tpu as pltpu

_VMEM_BUDGET_BYTES = 48 * 1024 * 1024  # v7x-safe scoped-VMEM ceiling


def _round_up(x, m):
    return ((x + m - 1) // m) * m


def token_embed_gather_kernel(ids_ref, pos_ids_ref, w_ref, pos_tab_ref, out_ref):
    # ids_ref:     (N_pad,)     int32 SMEM  token id per flattened token
    # pos_ids_ref: (N_pad,)     int32 SMEM  position index per flattened token
    # w_ref:       (V, E)       float VMEM  content embedding table (resident)
    # pos_tab_ref: (max_len, E) float VMEM  sinusoidal positional table (resident)
    # out_ref:     (TM, E)      float VMEM  output tile
    tm = out_ref.shape[0]
    vocab = w_ref.shape[0]
    base = pl.program_id(0) * tm

    def row_body(r, carry):
        tok = ids_ref[base + r]
        # Clamp instead of silently reading out-of-bounds VMEM (v2 returned
        # zeros for OOB ids; PyTorch nn.Embedding would raise).
        tok = jnp.minimum(jnp.maximum(tok, 0), vocab - 1)
        l = pos_ids_ref[base + r]
        content = w_ref[pl.ds(tok, 1), :].astype(jnp.float32)    # (1, E) gather
        posv = pos_tab_ref[pl.ds(l, 1), :].astype(jnp.float32)   # (1, E) gather
        # dropout(x) + x in eval mode == 2 * x
        out_ref[pl.ds(r, 1), :] = (2.0 * (content + posv)).astype(out_ref.dtype)
        return carry

    jax.lax.fori_loop(0, tm, row_body, 0)


def token_embedding_forward(sequence, content_table, pos_table, *, tm=256,
                            out_dtype=None, param_dtype=None):
    """sequence: [B, L] int; content_table: [V, E]; pos_table: [max_len, E]."""
    B, L = sequence.shape
    V, E = content_table.shape
    max_len = pos_table.shape[0]
    if L > max_len:
        raise ValueError(f"sequence length {L} exceeds max_len {max_len}")

    # Optional bf16 tables: halves resident-table VMEM (gather stays exact in
    # *selection*; values get bf16-quantized).  Demo keeps f32 for exactness.
    if param_dtype is not None:
        content_table = content_table.astype(param_dtype)
        pos_table = pos_table.astype(param_dtype)
    if out_dtype is None:
        out_dtype = content_table.dtype

    # ---- flatten (B, L) -> N tokens, pad to a multiple of the token tile ----
    N = B * L
    tm = min(tm, _round_up(N, 8))
    # Prefer >= 2 token tiles so both v7x TensorCores get work on small batches.
    while N > 8 and _round_up(N, tm) // tm < 2 and tm > 8:
        tm = _round_up(tm // 2, 8)
    N_pad = _round_up(N, tm)
    n_tiles = N_pad // tm

    ids = jnp.zeros((N_pad,), jnp.int32).at[:N].set(
        sequence.reshape(N).astype(jnp.int32))
    pos_ids = jnp.zeros((N_pad,), jnp.int32).at[:N].set(
        jnp.tile(jnp.arange(L, dtype=jnp.int32), B))

    # ---- VMEM budget check (resident tables are double-buffered by default
    # pipelining; pl.Buffered(1) on the constant-index tables would halve this).
    w_item = jnp.dtype(content_table.dtype).itemsize
    p_item = jnp.dtype(pos_table.dtype).itemsize
    o_item = jnp.dtype(out_dtype).itemsize
    vmem_needed = (2 * V * E * w_item            # content table
                   + 2 * max_len * E * p_item    # positional table
                   + 2 * tm * E * o_item         # output tile
                   + (1 << 20))                  # slack for compiler scratch
    if vmem_needed > _VMEM_BUDGET_BYTES:
        # TODO(synk): fall back to the DMA-gather variant (table in pl.ANY +
        # per-row pltpu.make_async_copy) for vocabularies above the budget.
        raise NotImplementedError(
            f"embedding table too large for the VMEM-resident gather path "
            f"({vmem_needed} > {_VMEM_BUDGET_BYTES} bytes)")

    out_flat = pl.pallas_call(
        token_embed_gather_kernel,
        out_shape=jax.ShapeDtypeStruct((N_pad, E), out_dtype),
        grid_spec=pltpu.PrefetchScalarGridSpec(
            num_scalar_prefetch=2,            # ids, pos_ids -> SMEM
            grid=(n_tiles,),
            in_specs=[
                # Full tables with a constant block index: DMA'd from HBM once
                # and VMEM-resident across every token tile.
                pl.BlockSpec((V, E), lambda i, ids, pos: (0, 0)),
                pl.BlockSpec((max_len, E), lambda i, ids, pos: (0, 0)),
            ],
            out_specs=pl.BlockSpec((tm, E), lambda i, ids, pos: (i, 0)),
        ),
        compiler_params=pltpu.CompilerParams(
            dimension_semantics=("parallel",),
            vmem_limit_bytes=_VMEM_BUDGET_BYTES,
        ),
    )(ids, pos_ids, content_table, pos_table)

    return out_flat[:N].reshape(B, L, E)


def make_positional_table(max_len, d_model):
    # Standard BERT sinusoidal positional embedding (deterministic).
    pos = jnp.arange(max_len, dtype=jnp.float32)[:, None]           # (max_len, 1)
    i = jnp.arange(0, d_model, 2, dtype=jnp.float32)[None, :]       # (1, d_model/2)
    div = jnp.exp(-(jnp.log(10000.0) / d_model) * i)
    ang = pos * div                                                 # (max_len, d_model/2)
    pe = jnp.zeros((max_len, d_model), jnp.float32)
    pe = pe.at[:, 0::2].set(jnp.sin(ang))
    pe = pe.at[:, 1::2].set(jnp.cos(ang))
    return pe


if __name__ == "__main__":
    vocab_size, embed_size, max_len = 64, 32, 16
    B, L = 2, 8

    key = jax.random.PRNGKey(0)
    k_ids, k_emb = jax.random.split(key)

    sequence = jax.random.randint(k_ids, (B, L), 0, vocab_size, dtype=jnp.int32)
    content_table = jax.random.normal(k_emb, (vocab_size, embed_size), dtype=jnp.float32)
    pos_table = make_positional_table(max_len, embed_size)

    out = token_embedding_forward(sequence, content_table, pos_table)
    out = jax.block_until_ready(out)

    # Pure-JAX reference (eval-mode dropout => 2 * (pos + content)).
    ref = 2.0 * (content_table[sequence] + pos_table[:L][None, :, :])
    assert out.shape == (B, L, embed_size)
    assert jnp.allclose(out, ref, atol=1e-5, rtol=1e-5), "mismatch vs reference"

    print("KERNEL_OK")
</pallas_src>

<mosaic_0001>
module attributes {stable_mosaic.version = 11 : i64} {
  func.func @token_embed_gather_kernel(%arg0: i32, %arg1: memref<16xi32, #tpu.memory_space<smem>>, %arg2: memref<16xi32, #tpu.memory_space<smem>>, %arg3: memref<64x32xf32, #tpu.memory_space<vmem>>, %arg4: memref<16x32xf32, #tpu.memory_space<vmem>>, %arg5: memref<8x32xf32, #tpu.memory_space<vmem>>) attributes {dimension_semantics = [#tpu.dimension_semantics<parallel>], iteration_bounds = array<i64: 2>, scalar_prefetch = 2 : i64, scratch_operands = 0 : i64, tpu.core_type = #tpu.core_type<tc>, window_params = [{pipeline_mode = #tpu.pipeline_mode<synchronous>, transform_indices = @transform_0, window_bounds = array<i64: 64, 32>}, {pipeline_mode = #tpu.pipeline_mode<synchronous>, transform_indices = @transform_1, window_bounds = array<i64: 16, 32>}, {transform_indices = @transform_2, window_bounds = array<i64: 8, 32>}]} {
    %c8_i32 = arith.constant 8 : i32
    %0 = arith.muli %arg0, %c8_i32 : i32
    %c0_i32 = arith.constant 0 : i32
    %c8_i32_0 = arith.constant 8 : i32
    %1 = arith.addi %c0_i32, %c8_i32_0 : i32
    %c1_i32 = arith.constant 1 : i32
    scf.for %arg6 = %c0_i32 to %1 step %c1_i32  : i32 {
      %2 = arith.addi %0, %arg6 : i32
      %3 = arith.index_cast %2 : i32 to index
      %4 = memref.load %arg1[%3] : memref<16xi32, #tpu.memory_space<smem>>
      %c0_i32_2 = arith.constant 0 : i32
      %5 = arith.maxsi %4, %c0_i32_2 : i32
      %c63_i32 = arith.constant 63 : i32
      %6 = arith.minsi %5, %c63_i32 : i32
      %7 = arith.addi %0, %arg6 : i32
      %8 = arith.index_cast %7 : i32 to index
      %9 = memref.load %arg2[%8] : memref<16xi32, #tpu.memory_space<smem>>
      %10 = arith.index_cast %6 : i32 to index
      %c0 = arith.constant 0 : index
      %11 = vector.load %arg3[%10, %c0] : memref<64x32xf32, #tpu.memory_space<vmem>>, vector<1x32xf32>
      %12 = arith.index_cast %9 : i32 to index
      %c0_3 = arith.constant 0 : index
      %13 = vector.load %arg4[%12, %c0_3] : memref<16x32xf32, #tpu.memory_space<vmem>>, vector<1x32xf32>
      %14 = arith.addf %11, %13 : vector<1x32xf32>
      %cst = arith.constant 2.000000e+00 : f32
      %15 = vector.broadcast %cst : f32 to vector<1x32xf32>
      %16 = arith.mulf %15, %14 : vector<1x32xf32>
      %17 = arith.index_cast %arg6 : i32 to index
      %c0_4 = arith.constant 0 : index
      %18 = vector.load %arg5[%17, %c0_4] : memref<8x32xf32, #tpu.memory_space<vmem>>, vector<1x32xf32>
      tpu.vector_store %arg5[%17, %c0_4], %16 {strides = array<i32>} : memref<8x32xf32, #tpu.memory_space<vmem>>, vector<1x32xf32>,
    }
    %c8_i32_1 = arith.constant 8 : i32
    return
  }
  func.func @transform_0(%arg0: i32, %arg1: memref<16xi32, #tpu.memory_space<smem>>, %arg2: memref<16xi32, #tpu.memory_space<smem>>) -> (i32, i32) {
    %c0_i32 = arith.constant 0 : i32
    %c0_i32_0 = arith.constant 0 : i32
    %c0_i32_1 = arith.constant 0 : i32
    return %c0_i32, %c0_i32_0 : i32, i32
  }
  func.func @transform_1(%arg0: i32, %arg1: memref<16xi32, #tpu.memory_space<smem>>, %arg2: memref<16xi32, #tpu.memory_space<smem>>) -> (i32, i32) {
    %c0_i32 = arith.constant 0 : i32
    %c0_i32_0 = arith.constant 0 : i32
    %c0_i32_1 = arith.constant 0 : i32
    return %c0_i32, %c0_i32_0 : i32, i32
  }
  func.func @transform_2(%arg0: i32, %arg1: memref<16xi32, #tpu.memory_space<smem>>, %arg2: memref<16xi32, #tpu.memory_space<smem>>) -> (i32, i32) {
    %c0_i32 = arith.constant 0 : i32
    %c0_i32_0 = arith.constant 0 : i32
    return %arg0, %c0_i32 : i32, i32
  }
}

</mosaic_0001>

<bundles_post_ra>
// kernel: tpu_custom_call.1
= control target key start
LH: loop header
LB: loop body
LE: loop exit
PB: predicated region body
PF: predicated region fallthrough
CT: control target
= control target key end

     0   :  { %s394_s21 = smov [#allocation3]   ;;  %s395_s22 = smov [#allocation4]   ;;  %s517_s0 = inlined_call_operand.vmem [shape: s32[16], index: 0, kind: input, shape index: {}]   ;;  %s518_s2 = inlined_call_operand.vmem [shape: f32[64,32], index: 2, kind: input, shape index: {}]   ;;  %s519_s3 = inlined_call_operand.vmem [shape: f32[16,32], index: 3, kind: input, shape index: {}]   ;;  %s520_s4 = inlined_call_operand.hbm [shape: f32[16,32], index: 4, kind: output, shape index: {}]   ;;  %s521_s1 = inlined_call_operand.vmem [shape: s32[16], index: 1, kind: input, shape index: {}]  }
   0x1   :  { %s10_s17 = sshll.u32 %s517_s0, 4  ;;  %s15_s20 = sshll.u32 %s521_s1, 4  ;;  %s11_s17 = int_to_ptr.vmem [resolvable:$true] %s10_s17  ;;  %s16_s20 = int_to_ptr.vmem [resolvable:$true] %s15_s20 }
   0x2   :  { %13 = dma.vmem_to_smem %s11_s17, 16, %s394_s21, [#allocation2] }
   0x3   :  { %18 = dma.vmem_to_smem %s16_s20, 16, %s395_s22, [#allocation2] }
   0x4   :  { %368 = dma.done.wait [#allocation2], 32 }
   0x5   :  { %369 = vsyncadd [#allocation2], 4294967264 }
   0x6   :  { %21 = sfence }
   0x7   :  { %22 = vsyncpa [#allocation6], 0 }
   0x8   :  { %24 = vsyncpa [#allocation6 + $0x1], 0  ;;  %s427_s23 = smov 0   ;;  %s429_s24 = smov 0  }
   0x9   :  { %s431_s0 = smov 0   ;;  %s433_s25 = smov 0  }
   0xa LB: > { %s230_s1 = sadd.s32 4294967295, %s388_s25   ;;  %s231_s26 = sadd.s32 4294967294, %s388_s25   ;;  %s388_s25 = sphi %s433_s25, %s527_s25   ;;  %s384_s0 = sphi %s431_s0, %s526_s0   ;;  %s380_s24 = sphi %s429_s24, %s525_s24   ;;  %s376_s23 = sphi %s427_s23, %s524_s23  }
   0xb   : > { %s450_s27 = sadd.s32 1, %s388_s25   ;;  %s79_s28 = sadd.s32 1, %s384_s0 }
   0xc   : > { %s76_s29 = ssub.s32 %s388_s25, %s450_s27  ;;  %p89_p0 = scmp.ne.s32.totalorder %s384_s0, %s380_s24 }
   0xd   : > { %p77_p1 = scmp.eq.s32.totalorder %s76_s29, 0  ;;  %p90_p2 = scmp.eq.s32.totalorder %s230_s1, 1 }
   0xe   : > { %p95_p3 = scmp.ne.s32.totalorder %s380_s24, %s376_s23  ;;  %p96_p4 = scmp.eq.s32.totalorder %s231_s26, 1 }
   0xf   : > { %s460_s30 = scalar_select %p77_p1, %s384_s0, %s79_s28  }
  0x10   : > { %p462_p5 = por %p90_p2, %p89_p0  ;;  %p466_p6 = por %p96_p4, %p95_p3 }
  0x11   : > { %p233_p7 = scmp.ge.s32.totalorder %s388_s25, 1  ;;  %p120_p8 = scmp.lt.s32.totalorder %s388_s25, 3 }
  0x13   : > { %p121_p9 = pnand %p233_p7, %p120_p8 }
  0x14   : > { %s134_s7 = sand.u32 (!%p121_p9), 1, %s380_s24   ;;  %s473_s8 = sshll.u32 (!%p121_p9), %s230_s1, 3 }
  0x15   : > { %124 = sbr.rel (%p121_p9) target bundleno = 48 (0x30), region = 28  ;;  %s234_s9 = sshll.u32 (!%p121_p9), %s134_s7, 3 }
  0x16   : > { %s136_s10 = scalar_lea.vmem (!%p121_p9), [#allocation5], %s234_s9  ;;  %s390_s11 = smov (!%p121_p9), 0  }
  0x1a LB: >> { %s144_s12 = sadd.s32 %s392_s11, %s473_s8  ;;  %s157_s21 = scalar_lea.vmem %s136_s10, %s392_s11 [#allocation5]  ;;  %vm158_vm0 = vcmask 253952   ;;  %s392_s11 = sphi %s390_s11, %s143_s11  }
  0x1b   : >> { %s145_s13 = sld [smem:[#allocation3 + %s144_s12]]  ;;  %s143_s11 = sadd.s32 1, %s392_s11  }
  0x1c   : >> { %s150_s14 = sld [smem:[#allocation4 + %s144_s12]]  ;;  %p140_p12 = scmp.ge.s32.totalorder %s143_s11, 8  }
  0x1d   : > { %s171_s26 = scalar_lea.hbm (%p140_p12), %s520_s4, %s473_s8  ;;  %s173_s28 = sshll.u32 (%p140_p12), %s136_s10, 4  ;;  %s174_s28 = int_to_ptr.vmem [resolvable:$true] %s173_s28 }
  0x1e   : > { %s175_s29 = sshll.u32 (%p140_p12), %s171_s26, 4  ;;  %s161_s9 = scalar_lea.sflag (%p140_p12), [#allocation6], %s134_s7  ;;  %s176_s29 = int_to_ptr.hbm [resolvable:$true] %s175_s29 }
  0x1f   : > { %s334_s12 = sshra.s32 (%p140_p12), %s176_s29, 4  ;;  %s340_s15 = scalar_lea.hbm (%p140_p12), %s520_s4, 16  ;;  %s335_s12 = int_to_ptr.hbm [resolvable:$true] %s334_s12 }
  0x20   : > { %p341_p2 = scmp.lt.s32.totalorder (%p140_p12), %s335_s12, %s520_s4 }
  0x21   : >> { %p146_p10 = scmp.gt.s32.totalorder %s145_s13, 0  ;;  %p236_p11 = scmp.lt.s32.totalorder %s145_s13, 63 }
  0x22   : >> { %s153_s17 = scalar_lea.vmem %s519_s3, %s150_s14 }
  0x23   : >> { %s529_s13 = smov (!%p146_p10, %s145_s13), 0  ;;  %v154_v0 = vld [vmem:[%s153_s17] sm:$0x1] }
  0x24   : >> { %s531_s13 = smov (!%p236_p11, %s529_s13), 63 }
  0x25   : >> { %s151_s20 = scalar_lea.vmem %s518_s2, %s531_s13  ;;  %s336_s13 = scalar_lea.hbm (%p140_p12), %s335_s12, 8 }
  0x26   : >> { %v152_v1 = vld [vmem:[%s151_s20] sm:$0x1]  ;;  %p337_p13 = scmp.ne.s32.totalorder (%p140_p12), %s335_s12, %s336_s13  ;;  %p342_p3 = scmp.lt.s32.totalorder (%p140_p12), %s340_s15, %s336_s13 }
  0x27   : >> { %v155_v2 = vadd.f32 %v154_v0, %v152_v1  ;;  %142 = sbr.rel (!%p140_p12) target bundleno = 26 (0x1a), region = 70 }
  0x28   : > { %p338_p0 = pnand (%p140_p12), %p337_p13, %p462_p5  ;;  %p343_p4 = por (%p140_p12), %p342_p3, %p341_p2 }
  0x29   : >> { %v156_v3 = vmul.f32 2.0, %v155_v2 }
  0x2a   : > { %p339_p1 = pneg (%p140_p12), %p338_p0 }
  0x2b   : >> { %159 = vst.msk [vmem:[%s157_s21] sm:$0x1] %vm158_vm0, %v156_v3 }
  0x2c   : > { %p344_p7 = pnand %p343_p4, %p339_p1 }
  0x2e   : > { %347 = shalt.err (!%p344_p7)
}
  0x2f   : > { %247 = dma.vmem_to_hbm [thread:$0]  (%p462_p5), %s174_s28, 128, %s176_s29, %s161_s9  }
  0x30 PF: > { %p253_p8 = scmp.ge.s32.totalorder %s388_s25, 2  ;;  %s187_s7 = sand.u32 1, %s376_s23  }
  0x31   : > { %s188_s8 = scalar_lea.sflag [#allocation6], %s187_s7 }
  0x32   : > { %p250_p9 = pnand %p253_p8, %p466_p6 }
  0x34   : > { %p251_p10 = pneg %p250_p9 }
  0x36   : > { %371 = dma.done.wait (%p251_p10), %s188_s8, 128  }
  0x37   : > { %373 = vsyncadd (%p251_p10), %s188_s8, 4294967168  ;;  %p27_p11 = scmp.ge.s32.totalorder %s450_s27, 4   ;;  %s524_s23 = smov %s380_s24 }
  0x38   : > { %s525_s24 = smov %s384_s0  ;;  %s526_s0 = smov %s460_s30 }
  0x39   : > { %s527_s25 = smov %s450_s27  ;;  %29 = sbr.rel (!%p27_p11) target bundleno = 10 (0xa), region = 81 }
  0x3e   :  { %194 = vsyncpa [#allocation6], 1 }
  0x3f   :  { %196 = vsyncpa [#allocation6 + $0x1], 1 }

</bundles_post_ra>
